<compile_context>
chip_gen: v6e
topology: v6e:2x2x1
jax: 0.10.0
libtpu: 0.0.40
codegen_flags: <defaults>
</compile_context>

<pallas_src>
import functools

import jax
import jax.numpy as jnp
from jax.experimental import pallas as pl
from jax.experimental.pallas import tpu as pltpu

_LANES = 128


def _round_up(a, b):
    return ((a + b - 1) // b) * b


def _ceil_div(a, b):
    return -(-a // b)


# ---------------------------------------------------------------------------
# Pallas kernel: fused full-MLP forward for one (folded) batch tile.
# All shapes are already lane-folded by the wrapper:
#   x_ref     (tile_rows, fold*input_dim)
#   w_in_ref  (fold*input_dim, fold*hidden_dim)   block-diagonal
#   b_in_ref  (1, fold*hidden_dim)                lane-tiled bias
#   w_h_ref   (num_layers, fold*hidden, fold*hidden) block-diagonal
#   b_h_ref   (num_layers, fold*hidden)
#   w_out_ref (fold*hidden, fold*output_dim)      block-diagonal
#   b_out_ref (1, fold*output_dim)
#   o_ref     (tile_rows, fold*output_dim)
# ---------------------------------------------------------------------------
def _mlp_kernel(*refs, num_layers):
    if num_layers > 0:
        (x_ref, w_in_ref, b_in_ref, w_h_ref, b_h_ref,
         w_out_ref, b_out_ref, o_ref) = refs
    else:
        x_ref, w_in_ref, b_in_ref, w_out_ref, b_out_ref, o_ref = refs
        w_h_ref = b_h_ref = None

    # ---- input layer + activation (single MXU dot) ----
    h = jnp.tanh(
        jnp.dot(x_ref[...], w_in_ref[...],
                preferred_element_type=jnp.float32) + b_in_ref[...])

    # ---- hidden layers + activation (static unroll; num_layers is small) ----
    for i in range(num_layers):
        h = jnp.tanh(
            jnp.dot(h, w_h_ref[i], preferred_element_type=jnp.float32)
            + b_h_ref[i:i + 1, :])

    # ---- output layer (no activation); unpadded lane store ----
    o_ref[...] = (
        jnp.dot(h, w_out_ref[...], preferred_element_type=jnp.float32)
        + b_out_ref[...]).astype(o_ref.dtype)


# ---------------------------------------------------------------------------
# Wrapper
# ---------------------------------------------------------------------------
def _block_diag(w, fold):
    """(din, dout) -> (fold*din, fold*dout) block-diagonal replication."""
    if fold == 1:
        return w
    din, dout = w.shape
    eye = jnp.eye(fold, dtype=w.dtype)
    return (eye[:, None, :, None] * w[None, :, None, :]).reshape(
        fold * din, fold * dout)


def mlp_forward(x, params, *, num_layers, tile_m=4096):
    """Fused MLP forward with a Pallas TPU kernel.

    x: [batch, input_dim] float32
    params: dict with
        w_in  [input_dim, hidden_dim], b_in  [hidden_dim]
        w_h   [num_layers, hidden_dim, hidden_dim], b_h [num_layers, hidden_dim]
        w_out [hidden_dim, output_dim], b_out [output_dim]
    """
    batch, input_dim = x.shape
    hidden_dim = params["w_in"].shape[1]
    output_dim = params["w_out"].shape[1]

    # ---- lane fold factor: pack `fold` batch rows per 128-lane vreg ----
    if hidden_dim <= _LANES and _LANES % hidden_dim == 0:
        fold = _LANES // hidden_dim
    else:
        fold = 1

    # ---- fold weights / biases (done once per call, tiny arrays) ----
    w_in_f = _block_diag(params["w_in"], fold)                 # (f*in, f*hid)
    b_in_f = jnp.tile(params["b_in"], fold).reshape(1, -1)     # (1, f*hid)
    w_out_f = _block_diag(params["w_out"], fold)               # (f*hid, f*out)
    b_out_f = jnp.tile(params["b_out"], fold).reshape(1, -1)   # (1, f*out)
    if num_layers > 0:
        w_h_f = jnp.stack(
            [_block_diag(params["w_h"][i], fold) for i in range(num_layers)],
            axis=0)                                            # (nl, f*h, f*h)
        b_h_f = jnp.tile(params["b_h"], (1, fold))             # (nl, f*h)

    fin = fold * input_dim
    fhid = fold * hidden_dim
    fout = fold * output_dim

    # ---- batch padding & tile selection (balanced, sublane aligned) ----
    m_align = fold * 8                               # folded rows multiple of 8
    batch_aligned = _round_up(batch, m_align)
    f_rows = batch_aligned // fold
    tile_rows_max = max(8, _round_up(tile_m, m_align) // fold)
    n_steps = _ceil_div(f_rows, tile_rows_max)
    tile_rows = _round_up(_ceil_div(f_rows, n_steps), 8)
    padded_f = _round_up(f_rows, tile_rows)
    padded_batch = padded_f * fold
    if padded_batch != batch:
        x = jnp.pad(x, ((0, padded_batch - batch), (0, 0)))

    # fold the batch into lanes: contiguous row-major reshape (free)
    x_f = x.reshape(padded_f, fin)
    grid = (padded_f // tile_rows,)

    kernel = functools.partial(_mlp_kernel, num_layers=num_layers)

    in_specs = [
        # folded x: tiled over folded-batch rows
        pl.BlockSpec((tile_rows, fin), lambda i: (i, 0)),
        # weights / biases: full arrays, resident for every grid step
        pl.BlockSpec((fin, fhid), lambda i: (0, 0)),
        pl.BlockSpec((1, fhid), lambda i: (0, 0)),
    ]
    args = [x_f, w_in_f, b_in_f]
    if num_layers > 0:
        in_specs += [
            pl.BlockSpec((num_layers, fhid, fhid), lambda i: (0, 0, 0)),
            pl.BlockSpec((num_layers, fhid), lambda i: (0, 0)),
        ]
        args += [w_h_f, b_h_f]
    in_specs += [
        pl.BlockSpec((fhid, fout), lambda i: (0, 0)),
        pl.BlockSpec((1, fout), lambda i: (0, 0)),
    ]
    args += [w_out_f, b_out_f]

    out = pl.pallas_call(
        kernel,
        out_shape=jax.ShapeDtypeStruct((padded_f, fout), jnp.float32),
        grid_spec=pltpu.PrefetchScalarGridSpec(
            num_scalar_prefetch=0,
            grid=grid,
            in_specs=in_specs,
            # last block dim == full array dim -> legal, unpadded store
            out_specs=pl.BlockSpec((tile_rows, fout), lambda i: (i, 0)),
        ),
        compiler_params=pltpu.CompilerParams(
            dimension_semantics=("parallel",)),
    )(*args)

    # unfold (free contiguous reshape) and drop padded rows
    return out.reshape(padded_batch, output_dim)[:batch]


# ---------------------------------------------------------------------------
# Deterministic parameter init (Xavier uniform weights, zero biases),
# matching torch.nn.init.xavier_uniform_ on a [out, in] weight.
# ---------------------------------------------------------------------------
def _xavier_uniform(key, fan_in, fan_out):
    bound = jnp.sqrt(6.0 / (fan_in + fan_out))
    w = jax.random.uniform(key, (fan_out, fan_in), jnp.float32, -bound, bound)
    return w.T  # kernel uses [in, out] orientation


def init_mlp_params(key, input_dim, hidden_dim, output_dim, num_layers):
    keys = jax.random.split(key, num_layers + 2)
    w_in = _xavier_uniform(keys[0], input_dim, hidden_dim)
    b_in = jnp.zeros((hidden_dim,), jnp.float32)
    if num_layers > 0:
        w_h = jnp.stack(
            [_xavier_uniform(keys[1 + i], hidden_dim, hidden_dim)
             for i in range(num_layers)], axis=0)
    else:
        w_h = jnp.zeros((0, hidden_dim, hidden_dim), jnp.float32)
    b_h = jnp.zeros((max(num_layers, 0), hidden_dim), jnp.float32)
    w_out = _xavier_uniform(keys[-1], hidden_dim, output_dim)
    b_out = jnp.zeros((output_dim,), jnp.float32)
    return dict(w_in=w_in, b_in=b_in, w_h=w_h, b_h=b_h,
                w_out=w_out, b_out=b_out)


# ---------------------------------------------------------------------------
# Pure-JAX reference for correctness checks.
# ---------------------------------------------------------------------------
def mlp_reference(x, params, num_layers):
    h = jnp.tanh(x @ params["w_in"] + params["b_in"])
    for i in range(num_layers):
        h = jnp.tanh(h @ params["w_h"][i] + params["b_h"][i])
    return h @ params["w_out"] + params["b_out"]


if __name__ == "__main__":
    # arch: input_dim=4, hidden_dim=32, output_dim=2, num_layers=2, act="tanh"
    INPUT_DIM, HIDDEN_DIM, OUTPUT_DIM, NUM_LAYERS = 4, 32, 2, 2

    key = jax.random.PRNGKey(0)
    k_params, k_params0, k_x1, k_x2, k_x3 = jax.random.split(key, 5)

    params = init_mlp_params(k_params, INPUT_DIM, HIDDEN_DIM, OUTPUT_DIM,
                             NUM_LAYERS)

    # 1) basic case
    x = jax.random.normal(k_x1, (16, INPUT_DIM), jnp.float32)
    out = jax.block_until_ready(mlp_forward(x, params, num_layers=NUM_LAYERS))
    ref = mlp_reference(x, params, NUM_LAYERS)
    assert out.shape == (16, OUTPUT_DIM)
    assert jnp.allclose(out, ref, atol=1e-5, rtol=1e-5), "mismatch (base case)"

    # 2) ragged batch (exercises fold/padding path)
    x2 = jax.random.normal(k_x2, (20, INPUT_DIM), jnp.float32)
    out2 = jax.block_until_ready(
        mlp_forward(x2, params, num_layers=NUM_LAYERS))
    ref2 = mlp_reference(x2, params, NUM_LAYERS)
    assert out2.shape == (20, OUTPUT_DIM)
    assert jnp.allclose(out2, ref2, atol=1e-5, rtol=1e-5), "mismatch (ragged)"

    # 3) larger batch exercising a multi-step grid with a small tile_m
    x3 = jax.random.normal(k_x3, (1025, INPUT_DIM), jnp.float32)
    out3 = jax.block_until_ready(
        mlp_forward(x3, params, num_layers=NUM_LAYERS, tile_m=512))
    ref3 = mlp_reference(x3, params, NUM_LAYERS)
    assert out3.shape == (1025, OUTPUT_DIM)
    assert jnp.allclose(out3, ref3, atol=1e-5, rtol=1e-5), "mismatch (multi)"

    # 4) zero hidden layers edge case
    params0 = init_mlp_params(k_params0, INPUT_DIM, HIDDEN_DIM, OUTPUT_DIM, 0)
    out0 = jax.block_until_ready(mlp_forward(x, params0, num_layers=0))
    ref0 = mlp_reference(x, params0, 0)
    assert jnp.allclose(out0, ref0, atol=1e-5, rtol=1e-5), "mismatch (nl=0)"

    print("KERNEL_OK")
</pallas_src>

<mosaic_0001>
module attributes {stable_mosaic.version = 11 : i64} {
  func.func @_mlp_kernel(%arg0: i32, %arg1: memref<8x16xf32, #tpu.memory_space<vmem>>, %arg2: memref<16x128xf32, #tpu.memory_space<vmem>>, %arg3: memref<1x128xf32, #tpu.memory_space<vmem>>, %arg4: memref<2x128x128xf32, #tpu.memory_space<vmem>>, %arg5: memref<2x128xf32, #tpu.memory_space<vmem>>, %arg6: memref<128x8xf32, #tpu.memory_space<vmem>>, %arg7: memref<1x8xf32, #tpu.memory_space<vmem>>, %arg8: memref<8x8xf32, #tpu.memory_space<vmem>>) attributes {dimension_semantics = [#tpu.dimension_semantics<parallel>], iteration_bounds = array<i64: 1>, scalar_prefetch = 0 : i64, scratch_operands = 0 : i64, tpu.core_type = #tpu.core_type<tc>, window_params = [{transform_indices = @transform_0, window_bounds = array<i64: 8, 16>}, {pipeline_mode = #tpu.pipeline_mode<synchronous>, transform_indices = @transform_1, window_bounds = array<i64: 16, 128>}, {pipeline_mode = #tpu.pipeline_mode<synchronous>, transform_indices = @transform_2, window_bounds = array<i64: 1, 128>}, {pipeline_mode = #tpu.pipeline_mode<synchronous>, transform_indices = @transform_3, window_bounds = array<i64: 2, 128, 128>}, {pipeline_mode = #tpu.pipeline_mode<synchronous>, transform_indices = @transform_4, window_bounds = array<i64: 2, 128>}, {pipeline_mode = #tpu.pipeline_mode<synchronous>, transform_indices = @transform_5, window_bounds = array<i64: 128, 8>}, {pipeline_mode = #tpu.pipeline_mode<synchronous>, transform_indices = @transform_6, window_bounds = array<i64: 1, 8>}, {transform_indices = @transform_7, window_bounds = array<i64: 8, 8>}]} {
    %c0 = arith.constant 0 : index
    %c0_0 = arith.constant 0 : index
    %0 = vector.load %arg1[%c0, %c0_0] : memref<8x16xf32, #tpu.memory_space<vmem>>, vector<8x16xf32>
    %c0_1 = arith.constant 0 : index
    %c0_2 = arith.constant 0 : index
    %1 = vector.load %arg2[%c0_1, %c0_2] : memref<16x128xf32, #tpu.memory_space<vmem>>, vector<16x128xf32>
    %cst = arith.constant dense<0.000000e+00> : vector<8x128xf32>
    %2 = tpu.matmul %0, %1, %cst {dimension_numbers = #tpu.dot_dimension_numbers<[1], [0], [0], [1], [0, 0, 1, 1], [], []>} : vector<8x16xf32>, vector<16x128xf32>, vector<8x128xf32> -> vector<8x128xf32>
    %c0_3 = arith.constant 0 : index
    %c0_4 = arith.constant 0 : index
    %3 = vector.load %arg3[%c0_3, %c0_4] : memref<1x128xf32, #tpu.memory_space<vmem>>, vector<1x128xf32>
    %4 = vector.broadcast %3 : vector<1x128xf32> to vector<8x128xf32>
    %5 = arith.addf %2, %4 : vector<8x128xf32>
    %6 = math.tanh %5 : vector<8x128xf32>
    %c0_5 = arith.constant 0 : index
    %c0_6 = arith.constant 0 : index
    %c0_7 = arith.constant 0 : index
    %7 = vector.load %arg4[%c0_5, %c0_6, %c0_7] : memref<2x128x128xf32, #tpu.memory_space<vmem>>, vector<1x128x128xf32>
    %8 = vector.shape_cast %7 : vector<1x128x128xf32> to vector<128x128xf32>
    %cst_8 = arith.constant dense<0.000000e+00> : vector<8x128xf32>
    %9 = tpu.matmul %6, %8, %cst_8 {dimension_numbers = #tpu.dot_dimension_numbers<[1], [0], [0], [1], [0, 0, 1, 1], [], []>} : vector<8x128xf32>, vector<128x128xf32>, vector<8x128xf32> -> vector<8x128xf32>
    %c0_9 = arith.constant 0 : index
    %c0_10 = arith.constant 0 : index
    %10 = vector.load %arg5[%c0_9, %c0_10] : memref<2x128xf32, #tpu.memory_space<vmem>>, vector<1x128xf32>
    %11 = vector.broadcast %10 : vector<1x128xf32> to vector<8x128xf32>
    %12 = arith.addf %9, %11 : vector<8x128xf32>
    %13 = math.tanh %12 : vector<8x128xf32>
    %c1 = arith.constant 1 : index
    %c0_11 = arith.constant 0 : index
    %c0_12 = arith.constant 0 : index
    %14 = vector.load %arg4[%c1, %c0_11, %c0_12] : memref<2x128x128xf32, #tpu.memory_space<vmem>>, vector<1x128x128xf32>
    %15 = vector.shape_cast %14 : vector<1x128x128xf32> to vector<128x128xf32>
    %cst_13 = arith.constant dense<0.000000e+00> : vector<8x128xf32>
    %16 = tpu.matmul %13, %15, %cst_13 {dimension_numbers = #tpu.dot_dimension_numbers<[1], [0], [0], [1], [0, 0, 1, 1], [], []>} : vector<8x128xf32>, vector<128x128xf32>, vector<8x128xf32> -> vector<8x128xf32>
    %c1_14 = arith.constant 1 : index
    %c0_15 = arith.constant 0 : index
    %17 = vector.load %arg5[%c1_14, %c0_15] : memref<2x128xf32, #tpu.memory_space<vmem>>, vector<1x128xf32>
    %18 = vector.broadcast %17 : vector<1x128xf32> to vector<8x128xf32>
    %19 = arith.addf %16, %18 : vector<8x128xf32>
    %20 = math.tanh %19 : vector<8x128xf32>
    %c0_16 = arith.constant 0 : index
    %c0_17 = arith.constant 0 : index
    %21 = vector.load %arg6[%c0_16, %c0_17] : memref<128x8xf32, #tpu.memory_space<vmem>>, vector<128x8xf32>
    %cst_18 = arith.constant dense<0.000000e+00> : vector<8x8xf32>
    %22 = tpu.matmul %20, %21, %cst_18 {dimension_numbers = #tpu.dot_dimension_numbers<[1], [0], [0], [1], [0, 0, 1, 1], [], []>} : vector<8x128xf32>, vector<128x8xf32>, vector<8x8xf32> -> vector<8x8xf32>
    %c0_19 = arith.constant 0 : index
    %c0_20 = arith.constant 0 : index
    %23 = vector.load %arg7[%c0_19, %c0_20] : memref<1x8xf32, #tpu.memory_space<vmem>>, vector<1x8xf32>
    %24 = vector.broadcast %23 : vector<1x8xf32> to vector<8x8xf32>
    %25 = arith.addf %22, %24 : vector<8x8xf32>
    %c0_21 = arith.constant 0 : index
    %c0_22 = arith.constant 0 : index
    %26 = vector.load %arg8[%c0_21, %c0_22] : memref<8x8xf32, #tpu.memory_space<vmem>>, vector<8x8xf32>
    tpu.vector_store %arg8[%c0_21, %c0_22], %25 {strides = array<i32>} : memref<8x8xf32, #tpu.memory_space<vmem>>, vector<8x8xf32>,
    return
  }
  func.func @transform_0(%arg0: i32) -> (i32, i32) {
    %c0_i32 = arith.constant 0 : i32
    %c0_i32_0 = arith.constant 0 : i32
    return %arg0, %c0_i32 : i32, i32
  }
  func.func @transform_1(%arg0: i32) -> (i32, i32) {
    %c0_i32 = arith.constant 0 : i32
    %c0_i32_0 = arith.constant 0 : i32
    %c0_i32_1 = arith.constant 0 : i32
    return %c0_i32, %c0_i32_0 : i32, i32
  }
  func.func @transform_2(%arg0: i32) -> (i32, i32) {
    %c0_i32 = arith.constant 0 : i32
    %c0_i32_0 = arith.constant 0 : i32
    %c0_i32_1 = arith.constant 0 : i32
    return %c0_i32, %c0_i32_0 : i32, i32
  }
  func.func @transform_3(%arg0: i32) -> (i32, i32, i32) {
    %c0_i32 = arith.constant 0 : i32
    %c0_i32_0 = arith.constant 0 : i32
    %c0_i32_1 = arith.constant 0 : i32
    %c0_i32_2 = arith.constant 0 : i32
    return %c0_i32, %c0_i32_0, %c0_i32_1 : i32, i32, i32
  }
  func.func @transform_4(%arg0: i32) -> (i32, i32) {
    %c0_i32 = arith.constant 0 : i32
    %c0_i32_0 = arith.constant 0 : i32
    %c0_i32_1 = arith.constant 0 : i32
    return %c0_i32, %c0_i32_0 : i32, i32
  }
  func.func @transform_5(%arg0: i32) -> (i32, i32) {
    %c0_i32 = arith.constant 0 : i32
    %c0_i32_0 = arith.constant 0 : i32
    %c0_i32_1 = arith.constant 0 : i32
    return %c0_i32, %c0_i32_0 : i32, i32
  }
  func.func @transform_6(%arg0: i32) -> (i32, i32) {
    %c0_i32 = arith.constant 0 : i32
    %c0_i32_0 = arith.constant 0 : i32
    %c0_i32_1 = arith.constant 0 : i32
    return %c0_i32, %c0_i32_0 : i32, i32
  }
  func.func @transform_7(%arg0: i32) -> (i32, i32) {
    %c0_i32 = arith.constant 0 : i32
    %c0_i32_0 = arith.constant 0 : i32
    return %arg0, %c0_i32 : i32, i32
  }
}

</mosaic_0001>

<bundles_post_ra>
// kernel: tpu_custom_call.1
= control target key start
LH: loop header
LB: loop body
LE: loop exit
PB: predicated region body
PF: predicated region fallthrough
CT: control target
= control target key end

     0   :  { %12 = vsyncpa [#allocation3], 0  ;;  %s827_s0 = inlined_call_operand.vmem [shape: f32[8,16], index: 0, kind: input, shape index: {}]   ;;  %s828_s1 = inlined_call_operand.vmem [shape: f32[16,128], index: 1, kind: input, shape index: {}]   ;;  %s829_s2 = inlined_call_operand.vmem [shape: f32[1,128], index: 2, kind: input, shape index: {}]   ;;  %s830_s3 = inlined_call_operand.hbm [shape: f32[2,128,128], index: 3, kind: input, shape index: {}]   ;;  %s831_s4 = inlined_call_operand.vmem [shape: f32[2,128], index: 4, kind: input, shape index: {}]   ;;  %s832_s5 = inlined_call_operand.vmem [shape: f32[128,8], index: 5, kind: input, shape index: {}]   ;;  %s833_s6 = inlined_call_operand.vmem [shape: f32[1,8], index: 6, kind: input, shape index: {}]   ;;  %s834_s7 = inlined_call_operand.hbm [shape: f32[8,8], index: 7, kind: output, shape index: {}]  }
   0x1   :  { %13 = vsyncpa [#allocation4], 0  ;;  %s648_s24 = smov [#allocation2]  }
   0x2   :  { %s25_s25 = sshll.u32 %s648_s24, 4  ;;  %s26_s25 = int_to_ptr.vmem [resolvable:$true] %s25_s25 }
   0x3   :  { %s612_s26 = scalar_lea.vmem %s26_s25, 4096  ;;  %p617_p1 = scmp.lt.s32.totalorder %s26_s25, %s26_s25 }
   0x4   :  { %p613_p0 = scmp.ne.s32.totalorder %s26_s25, %s612_s26  ;;  %p618_p2 = scmp.lt.s32.totalorder %s612_s26, %s612_s26 }
   0x6   :  { %p619_p3 = por %p618_p2, %p617_p1 }
   0x8   :  { %p620_p4 = pnand %p619_p3, %p613_p0 }
   0xa   :  { %623 = shalt.err (!%p620_p4)
}
   0xb   :  { %s649_s27 = smov 128   ;;  %s650_s28 = smov 8  }
   0xc   :  { %31 = dma.hbm_to_vmem [thread:$0]  %s830_s3, 4096, %s26_s25, [#allocation3], %s649_s27, %s649_s27, %s650_s28  }
   0xd   :  { %644 = dma.done.wait [#allocation3], 4096  }
   0xe   :  { %645 = vsyncadd [#allocation3], 4294963200  ;;  %v651_v0 = vmov 0.0   ;;  %vm652_vm0 = vmmov 0   ;;  %v43_v1 = vld [vmem:[%s828_s1 + $0x8] sm:$0xff]  ;;  %v42_v2 = vld [vmem:[%s828_s1] sm:$0xff] }
   0xf   :  { %480 = vmatprep.subr.mxu0 %v651_v0  ;;  %484 = vmatprep.mubr.msk.f32.mxu0 %vm652_vm0, %v651_v0  ;;  %v41_v3 = vld [vmem:[%s827_s0] sm:$0xff]  ;;  %vm51_vm1 = vcmask 130048   ;;  %v141_v4 = vld [vmem:[#allocation2 + $0x78] sm:$0xff]  ;;  %v140_v5 = vld [vmem:[#allocation2 + $0x70] sm:$0xff]  ;;  %s653_s23 = smov [#allocation5]   ;;  %vm404_vm2 = vcmask 64512  }
  0x10   :  { %487 = vmatprep.subr.mxu1 %v651_v0  ;;  %519 = vmatprep.mubr.msk.f32.mxu1 %vm652_vm0, %v651_v0  ;;  %v139_v6 = vld [vmem:[#allocation2 + $0x68] sm:$0xff]  ;;  %v138_v7 = vld [vmem:[#allocation2 + $0x60] sm:$0xff]  ;;  %v137_v8 = vld [vmem:[#allocation2 + $0x58] sm:$0xff] }
  0x11   :  { %481 = vmatpush3.msra.mxu0 %v43_v1  ;;  %488 = vmatpush3.msra.mxu1 %v141_v4  ;;  %v136_v9 = vld [vmem:[#allocation2 + $0x50] sm:$0xff]  ;;  %v135_v10 = vld [vmem:[#allocation2 + $0x48] sm:$0xff]  ;;  %v134_v11 = vld [vmem:[#allocation2 + $0x40] sm:$0xff] }
  0x12   :  { %482 = vmatprep.subr.mxu0 %v651_v0  ;;  %489 = vmatprep.subr.mxu1 %v651_v0  ;;  %v133_v12 = vld [vmem:[#allocation2 + $0x38] sm:$0xff]  ;;  %v132_v13 = vld [vmem:[#allocation2 + $0x30] sm:$0xff]  ;;  %v131_v14 = vld [vmem:[#allocation2 + $0x28] sm:$0xff] }
  0x13   :  { %483 = vmatpush3.msra.mxu0 %v42_v2  ;;  %490 = vmatpush3.msra.mxu1 %v140_v5  ;;  %v130_v15 = vld [vmem:[#allocation2 + $0x20] sm:$0xff]  ;;  %v129_v16 = vld [vmem:[#allocation2 + $0x18] sm:$0xff]  ;;  %v128_v17 = vld [vmem:[#allocation2 + $0x10] sm:$0xff] }
  0x14   :  { %485 = vmatmul.mubr.msk.f32.vlgmr.msra.gmra.mxu0 %vm51_vm1, %v41_v3  ;;  %491 = vmatprep.subr.mxu1 %v651_v0  ;;  %v127_v18 = vld [vmem:[#allocation2 + $0x8] sm:$0xff]  ;;  %v126_v19 = vld [vmem:[#allocation2] sm:$0xff]  ;;  %v234_v20 = vld [vmem:[#allocation2 + $0xf8] sm:$0xff] }
  0x15   :  { %522 = vmatprep.subr.mxu0 %v651_v0  ;;  %492 = vmatpush3.msra.mxu1 %v139_v6  ;;  %v233_v21 = vld [vmem:[#allocation2 + $0xf0] sm:$0xff]  ;;  %v232_v22 = vld [vmem:[#allocation2 + $0xe8] sm:$0xff]  ;;  %v231_v23 = vld [vmem:[#allocation2 + $0xe0] sm:$0xff] }
  0x16   :  { %554 = vmatprep.mubr.msk.f32.mxu0 %vm652_vm0, %v651_v0  ;;  %493 = vmatprep.subr.mxu1 %v651_v0  ;;  %v230_v24 = vld [vmem:[#allocation2 + $0xd8] sm:$0xff]  ;;  %v229_v25 = vld [vmem:[#allocation2 + $0xd0] sm:$0xff]  ;;  %v228_v26 = vld [vmem:[#allocation2 + $0xc8] sm:$0xff] }
  0x17   :  { %494 = vmatpush3.msra.mxu1 %v138_v7  ;;  %523 = vmatpush3.msra.mxu0 %v234_v20  ;;  %v421_v27 = vld [vmem:[%s829_s2] ss:$0 sm:$0xff]  ;;  %v226_v33 = vld [vmem:[#allocation2 + $0xb8] sm:$0xff]  ;;  %v225_v34 = vld [vmem:[#allocation2 + $0xb0] sm:$0xff] }
  0x18   :  { %495 = vmatprep.subr.mxu1 %v651_v0  ;;  %524 = vmatprep.subr.mxu0 %v651_v0  ;;  %v227_v32 = vld [vmem:[#allocation2 + $0xc0] sm:$0xff]  ;;  %v224_v35 = vld [vmem:[#allocation2 + $0xa8] sm:$0xff]  ;;  %v222_v37 = vld [vmem:[#allocation2 + $0x98] sm:$0xff] }
  0x19   :  { %496 = vmatpush3.msra.mxu1 %v137_v8  ;;  %525 = vmatpush3.msra.mxu0 %v233_v21  ;;  %v223_v36 = vld [vmem:[#allocation2 + $0xa0] sm:$0xff]  ;;  %v221_v38 = vld [vmem:[#allocation2 + $0x90] sm:$0xff]  ;;  %v220_v39 = vld [vmem:[#allocation2 + $0x88] sm:$0xff] }
  0x1a   :  { %497 = vmatprep.subr.mxu1 %v651_v0  ;;  %526 = vmatprep.subr.mxu0 %v651_v0  ;;  %v219_v40 = vld [vmem:[#allocation2 + $0x80] sm:$0xff]  ;;  %v326_v41 = vld [vmem:[%s832_s5 + $0x78] sm:$0xff]  ;;  %v325_v42 = vld [vmem:[%s832_s5 + $0x70] sm:$0xff] }
  0x1b   :  { %498 = vmatpush3.msra.mxu1 %v136_v9  ;;  %527 = vmatpush3.msra.mxu0 %v232_v22  ;;  %v324_v43 = vld [vmem:[%s832_s5 + $0x68] sm:$0xff]  ;;  %v323_v44 = vld [vmem:[%s832_s5 + $0x60] sm:$0xff]  ;;  %v322_v45 = vld [vmem:[%s832_s5 + $0x58] sm:$0xff] }
  0x1c   :  { %499 = vmatprep.subr.mxu1 %v651_v0  ;;  %528 = vmatprep.subr.mxu0 %v651_v0  ;;  %v321_v46 = vld [vmem:[%s832_s5 + $0x50] sm:$0xff]  ;;  %v320_v47 = vld [vmem:[%s832_s5 + $0x48] sm:$0xff]  ;;  %v423_v48 = vld [vmem:[%s831_s4] ss:$0 sm:$0xff] }
  0x1d   :  { %500 = vmatpush3.msra.mxu1 %v135_v10  ;;  %529 = vmatpush3.msra.mxu0 %v231_v23  ;;  %v319_v53 = vld [vmem:[%s832_s5 + $0x40] sm:$0xff]  ;;  %v318_v54 = vld [vmem:[%s832_s5 + $0x38] sm:$0xff]  ;;  %v317_v55 = vld [vmem:[%s832_s5 + $0x30] sm:$0xff] }
  0x1e   :  { %501 = vmatprep.subr.mxu1 %v651_v0  ;;  %530 = vmatprep.subr.mxu0 %v651_v0  ;;  %v316_v56 = vld [vmem:[%s832_s5 + $0x28] sm:$0xff]  ;;  %v315_v57 = vld [vmem:[%s832_s5 + $0x20] sm:$0xff]  ;;  %v314_v58 = vld [vmem:[%s832_s5 + $0x18] sm:$0xff] }
  0x1f   :  { %502 = vmatpush3.msra.mxu1 %v134_v11  ;;  %531 = vmatpush3.msra.mxu0 %v230_v24  ;;  %v313_v59 = vld [vmem:[%s832_s5 + $0x10] sm:$0xff]  ;;  %v312_v60 = vld [vmem:[%s832_s5 + $0x8] sm:$0xff]  ;;  %v311_v61 = vld [vmem:[%s832_s5] sm:$0xff]  ;;  %s412_s5 = sshll.u32 %s653_s23, 4  ;;  %s413_s5 = int_to_ptr.vmem [resolvable:$true] %s412_s5 }
  0x20   :  { %503 = vmatprep.subr.mxu1 %v651_v0  ;;  %532 = vmatprep.subr.mxu0 %v651_v0  ;;  %v424_v62 = vld [vmem:[%s831_s4 + $0x1] ss:$0 sm:$0xff]  ;;  %v425_v4 = vld [vmem:[%s833_s6] ss:$0 sm:$0xff]  ;;  %s624_s24 = scalar_lea.vmem %s413_s5, 128  ;;  %p629_p6 = scmp.lt.s32.totalorder %s413_s5, %s413_s5 }
  0x21   :  { %504 = vmatpush3.msra.mxu1 %v133_v12  ;;  %533 = vmatpush3.msra.mxu0 %v229_v25  ;;  %p625_p5 = scmp.ne.s32.totalorder %s413_s5, %s624_s24  ;;  %p630_p7 = scmp.lt.s32.totalorder %s624_s24, %s624_s24 }
  0x22   :  { %505 = vmatprep.subr.mxu1 %v651_v0  ;;  %534 = vmatprep.subr.mxu0 %v651_v0 }
  0x23   :  { %506 = vmatpush3.msra.mxu1 %v132_v13  ;;  %535 = vmatpush3.msra.mxu0 %v228_v26  ;;  %p631_p8 = por %p630_p7, %p629_p6 }
  0x24   :  { %507 = vmatprep.subr.mxu1 %v651_v0  ;;  %536 = vmatprep.subr.mxu0 %v651_v0 }
  0x25   :  { %508 = vmatpush3.msra.mxu1 %v131_v14  ;;  %537 = vmatpush3.msra.mxu0 %v227_v32  ;;  %p632_p9 = pnand %p631_p8, %p625_p5 }
  0x26   :  { %509 = vmatprep.subr.mxu1 %v651_v0  ;;  %538 = vmatprep.subr.mxu0 %v651_v0 }
  0x27   :  { %510 = vmatpush3.msra.mxu1 %v130_v15  ;;  %539 = vmatpush3.msra.mxu0 %v226_v33 }
  0x28   :  { %511 = vmatprep.subr.mxu1 %v651_v0  ;;  %540 = vmatprep.subr.mxu0 %v651_v0 }
  0x29   :  { %512 = vmatpush3.msra.mxu1 %v129_v16  ;;  %541 = vmatpush3.msra.mxu0 %v225_v34 }
  0x2a   :  { %513 = vmatprep.subr.mxu1 %v651_v0  ;;  %542 = vmatprep.subr.mxu0 %v651_v0 }
  0x2b   :  { %514 = vmatpush3.msra.mxu1 %v128_v17  ;;  %543 = vmatpush3.msra.mxu0 %v224_v35 }
  0x2c   :  { %515 = vmatprep.subr.mxu1 %v651_v0  ;;  %544 = vmatprep.subr.mxu0 %v651_v0 }
  0x2d   :  { %516 = vmatpush3.msra.mxu1 %v127_v18  ;;  %545 = vmatpush3.msra.mxu0 %v223_v36 }
  0x2e   :  { %517 = vmatprep.subr.mxu1 %v651_v0  ;;  %546 = vmatprep.subr.mxu0 %v651_v0 }
  0x2f   :  { %518 = vmatpush3.msra.mxu1 %v126_v19  ;;  %547 = vmatpush3.msra.mxu0 %v222_v37 }
  0x30   :  { %557 = vmatprep.subr.mxu1 %v651_v0  ;;  %548 = vmatprep.subr.mxu0 %v651_v0 }
  0x31   :  { %549 = vmatpush3.msra.mxu0 %v221_v38 }
  0x32   :  { %550 = vmatprep.subr.mxu0 %v651_v0 }
  0x33   :  { %551 = vmatpush3.msra.mxu0 %v220_v39 }
  0x34   :  { %552 = vmatprep.subr.mxu0 %v651_v0 }
  0x35   :  { %553 = vmatpush3.msra.mxu0 %v219_v40 }
  0xd4   :  { %v121_v28 = vpop.f32.mrf.mxu0 }
  0xd5   :  { %v122_v29 = vadd.f32 %v421_v27, %v121_v28 }
  0xd6   :  { %v486_v30 = vpop.f32.mrf.mxu0 }
  0xd7   :  { %598 = vtanh.f32 %v122_v29 }
  0xe4   :  { %v599_v31 = vpop.eup %598 }
  0xe5   :  { %520 = vmatmul.mubr.f32.vlgmr.msra.gmra.mxu1 %v599_v31 }
  0xe6   :  { %589 = vmatprep.mubr.msk.f32.mxu1 %vm652_vm0, %v651_v0  ;;  %558 = vmatpush3.msra.mxu1 %v326_v41 }
  0xe7   :  { %559 = vmatprep.subr.mxu1 %v651_v0 }
  0xe8   :  { %560 = vmatpush3.msra.mxu1 %v325_v42 }
  0xe9   :  { %561 = vmatprep.subr.mxu1 %v651_v0 }
  0xea   :  { %562 = vmatpush3.msra.mxu1 %v324_v43 }
  0xeb   :  { %563 = vmatprep.subr.mxu1 %v651_v0 }
  0xec   :  { %564 = vmatpush3.msra.mxu1 %v323_v44 }
  0xed   :  { %565 = vmatprep.subr.mxu1 %v651_v0 }
  0xee   :  { %566 = vmatpush3.msra.mxu1 %v322_v45 }
  0xef   :  { %567 = vmatprep.subr.mxu1 %v651_v0 }
  0xf0   :  { %568 = vmatpush3.msra.mxu1 %v321_v46 }
  0xf1   :  { %569 = vmatprep.subr.mxu1 %v651_v0 }
  0xf2   :  { %570 = vmatpush3.msra.mxu1 %v320_v47 }
  0xf3   :  { %571 = vmatprep.subr.mxu1 %v651_v0 }
  0xf4   :  { %572 = vmatpush3.msra.mxu1 %v319_v53 }
  0xf5   :  { %573 = vmatprep.subr.mxu1 %v651_v0 }
  0xf6   :  { %574 = vmatpush3.msra.mxu1 %v318_v54 }
  0xf7   :  { %575 = vmatprep.subr.mxu1 %v651_v0 }
  0xf8   :  { %576 = vmatpush3.msra.mxu1 %v317_v55 }
  0xf9   :  { %577 = vmatprep.subr.mxu1 %v651_v0 }
  0xfa   :  { %578 = vmatpush3.msra.mxu1 %v316_v56 }
  0xfb   :  { %579 = vmatprep.subr.mxu1 %v651_v0 }
  0xfc   :  { %580 = vmatpush3.msra.mxu1 %v315_v57 }
  0xfd   :  { %581 = vmatprep.subr.mxu1 %v651_v0 }
  0xfe   :  { %582 = vmatpush3.msra.mxu1 %v314_v58 }
  0xff   :  { %583 = vmatprep.subr.mxu1 %v651_v0 }
 0x100   :  { %584 = vmatpush3.msra.mxu1 %v313_v59 }
 0x101   :  { %585 = vmatprep.subr.mxu1 %v651_v0 }
 0x102   :  { %586 = vmatpush3.msra.mxu1 %v312_v60 }
 0x103   :  { %587 = vmatprep.subr.mxu1 %v651_v0 }
 0x104   :  { %588 = vmatpush3.msra.mxu1 %v311_v61 }
 0x1a5   :  { %v213_v49 = vpop.f32.mrf.mxu1 }
 0x1a6   :  { %v214_v50 = vadd.f32 %v423_v48, %v213_v49 }
 0x1a7   :  { %v521_v51 = vpop.f32.mrf.mxu1 }
 0x1a8   :  { %600 = vtanh.f32 %v214_v50 }
 0x1b5   :  { %v601_v52 = vpop.eup %600 }
 0x1b6   :  { %555 = vmatmul.mubr.f32.vlgmr.msra.gmra.mxu0 %v601_v52 }
 0x276   :  { %v306_v63 = vpop.f32.mrf.mxu0 }
 0x277   :  { %v307_v1 = vadd.f32 %v424_v62, %v306_v63 }
 0x278   :  { %v556_v2 = vpop.f32.mrf.mxu0 }
 0x279   :  { %602 = vtanh.f32 %v307_v1 }
 0x286   :  { %v603_v3 = vpop.eup %602 }
 0x287   :  { %590 = vmatmul.mubr.f32.vlgmr.msra.gmra.mxu1 %v603_v3 }
 0x347   :  { %v400_v5 = vpop.f32.mrf.mxu1 }
 0x348   :  { %v401_v0 = vadd.f32 %v425_v4, %v400_v5 }
 0x349   :  { %v591_v6 = vpop.f32.mrf.mxu1 }
 0x34a   :  { %405 = vst.msk [vmem:[#allocation5] sm:$0xff] %vm404_vm2, %v401_v0 }
 0x34b   :  { %635 = shalt.err (!%p632_p9)
}
 0x34c   :  { %415 = dma.vmem_to_hbm [thread:$0]  %s413_s5, 128, %s834_s7, [#allocation4]  }
 0x34d   :  { %646 = dma.done.wait [#allocation4], 128  }
 0x34e   :  { %647 = vsyncadd [#allocation4], 4294967168 }
 0x34f   :  { %419 = vsyncpa [#allocation3], 1 }
 0x350   :  { %420 = vsyncpa [#allocation4], 1 }

</bundles_post_ra>
